<compile_context>
chip_gen: v7x
topology: tpu7x:2x2x1
jax: 0.10.0
libtpu: 0.0.40
codegen_flags: <defaults>
</compile_context>

<pallas_src>
import jax
import jax.numpy as jnp
from jax.experimental import pallas as pl
from jax.experimental.pallas import tpu as pltpu


def _round_up(x, m):
    return ((x + m - 1) // m) * m


# -----------------------------------------------------------------------------
# Pallas kernel: one row-tile per grid step, all tasks fused block-diagonally.
#   p_ref : (TM, Kp)   bf16 im2col patch rows (incl. constant-1 bias column)
#   w1_ref: (Kp, Hp)   bf16 packed backbone weights (bias row + pass-through)
#   w2_ref: (Hp, Cp)   bf16 packed head weights (bias row)
#   o_ref : (TM, Cp)   f32 lane-dense output tile (all tasks' channels)
# Weight blocks have a constant block index -> stay resident in VMEM.
# -----------------------------------------------------------------------------
def _fused_kernel(p_ref, w1_ref, w2_ref, o_ref):
    h = jnp.maximum(
        jnp.dot(p_ref[...], w1_ref[...], preferred_element_type=jnp.float32),
        0.0)
    out = jnp.dot(h.astype(w2_ref.dtype), w2_ref[...],
                  preferred_element_type=jnp.float32)
    o_ref[...] = out.astype(o_ref.dtype)


def fused_forward(patches, w1_packed, w2_packed, *, tm):
    """patches: (Mp, Kp) bf16; w1_packed: (Kp, Hp) bf16; w2_packed: (Hp, Cp) bf16."""
    Mp, Kp = patches.shape
    Hp = w1_packed.shape[1]
    Cp = w2_packed.shape[1]
    return pl.pallas_call(
        _fused_kernel,
        out_shape=jax.ShapeDtypeStruct((Mp, Cp), jnp.float32),
        grid_spec=pltpu.PrefetchScalarGridSpec(
            num_scalar_prefetch=0,
            grid=(Mp // tm,),
            in_specs=[
                pl.BlockSpec((tm, Kp), lambda m: (m, 0)),
                pl.BlockSpec((Kp, Hp), lambda m: (0, 0)),   # resident across steps
                pl.BlockSpec((Hp, Cp), lambda m: (0, 0)),   # resident across steps
            ],
            out_specs=pl.BlockSpec((tm, Cp), lambda m: (m, 0)),
        ),
        compiler_params=pltpu.CompilerParams(
            # Single independent axis -> megacore shards row tiles on v7x.
            dimension_semantics=("parallel",)),
    )(patches, w1_packed, w2_packed)


# -----------------------------------------------------------------------------
# STR_Net wrapper in JAX
# -----------------------------------------------------------------------------
class STRNetPallas:
    """Mirrors STR_Net: holds per-task backbones + heads; `forward` is a no-op
    (the PyTorch module's forward is `pass`); `model_forward` is the
    self.model(x['image']) call used inside mt_step, fused across tasks."""

    def __init__(self, tasks, cin, hidden, out_channels, key):
        self.tasks = list(tasks)
        self.cin = cin
        self.hidden = hidden
        self.out_channels = dict(out_channels)

        # Raw (PyTorch-shaped) parameters per task, kept for reference checks.
        self.params = {}
        for i, task in enumerate(self.tasks):
            k1, k2, k3, k4 = jax.random.split(jax.random.fold_in(key, i), 4)
            cout = out_channels[task]
            self.params[task] = dict(
                w1=jax.random.normal(k1, (9, cin, hidden), jnp.float32) * 0.1,
                b1=jax.random.normal(k2, (1, hidden), jnp.float32) * 0.01,
                w2=jax.random.normal(k3, (hidden, cout), jnp.float32) * 0.1,
                b2=jax.random.normal(k4, (1, cout), jnp.float32) * 0.01,
            )

        # Block-diagonal packing of ALL tasks into one weight pair, padded to
        # 128 lanes, biases folded in (constant-1 patch column at index K,
        # shared constant-1 hidden channel at index total_hidden).
        K = 9 * cin
        T = len(self.tasks)
        total_hidden = hidden * T
        total_cout = sum(out_channels[t] for t in self.tasks)
        self.K = K
        self.Kp = _round_up(K + 1, 128)             # +1: constant-1 patch column
        self.Hp = _round_up(total_hidden + 1, 128)  # +1: shared pass-through chan
        self.Cp = _round_up(total_cout, 128)

        w1p = jnp.zeros((self.Kp, self.Hp), jnp.float32)
        w2p = jnp.zeros((self.Hp, self.Cp), jnp.float32)
        self.h_off, self.c_off = {}, {}
        h0, c0 = 0, 0
        for task in self.tasks:
            p = self.params[task]
            cout = out_channels[task]
            w1p = w1p.at[:K, h0:h0 + hidden].set(p["w1"].reshape(K, hidden))
            w1p = w1p.at[K, h0:h0 + hidden].set(p["b1"][0])      # backbone bias
            w2p = w2p.at[h0:h0 + hidden, c0:c0 + cout].set(p["w2"])
            w2p = w2p.at[total_hidden, c0:c0 + cout].set(p["b2"][0])  # head bias
            self.h_off[task] = h0
            self.c_off[task] = c0
            h0 += hidden
            c0 += cout
        # Shared constant-1 hidden channel carrying all head biases (relu(1)==1).
        w1p = w1p.at[K, total_hidden].set(1.0)

        # bf16 operands for full-rate MXU + halved HBM traffic; f32 accumulation
        # stays inside the kernel dots.
        self.w1_packed = w1p.astype(jnp.bfloat16)   # (Kp, Hp)
        self.w2_packed = w2p.astype(jnp.bfloat16)   # (Hp, Cp)

    def forward(self, x):
        # PyTorch STR_Net.forward is `pass`.
        return None

    def model_forward(self, image_nchw, *, tm=1024):
        """Equivalent of `self.model(x['image'])` in mt_step.
        Input: NCHW (PyTorch convention). Output: dict[task] -> NCHW (f32)."""
        N, C, H, W = image_nchw.shape
        x_nhwc = jnp.transpose(image_nchw, (0, 2, 3, 1))           # NCHW -> NHWC
        x_pad = jnp.pad(x_nhwc, ((0, 0), (1, 1), (1, 1), (0, 0)))  # pad=1 (3x3)

        # im2col in the wrapper (tap-major, channels inner) + constant-1 column.
        taps = [x_pad[:, dy:dy + H, dx:dx + W, :]
                for dy in range(3) for dx in range(3)]
        taps.append(jnp.ones((N, H, W, 1), x_nhwc.dtype))
        patches = jnp.concatenate(taps, axis=-1).reshape(N * H * W, self.K + 1)

        M = N * H * W
        tm = min(tm, _round_up(M, 8))                  # row tile, multiple of 8
        Mp = _round_up(M, tm)
        patches = jnp.pad(patches, ((0, Mp - M), (0, self.Kp - (self.K + 1))))
        patches = patches.astype(jnp.bfloat16)

        out = fused_forward(patches, self.w1_packed, self.w2_packed, tm=tm)

        results = {}
        for task in self.tasks:
            cout = self.out_channels[task]
            c0 = self.c_off[task]
            y = out[:M, c0:c0 + cout].reshape(N, H, W, cout)
            results[task] = jnp.transpose(y, (0, 3, 1, 2))  # NHWC -> NCHW
        return results


# -----------------------------------------------------------------------------
# Pure-JAX f32 reference (correctness sanity check vs raw per-task params)
# -----------------------------------------------------------------------------
def _ref_task_forward(x_nchw, w1, b1, w2, b2):
    N, C, H, W = x_nchw.shape
    x = jnp.transpose(x_nchw, (0, 2, 3, 1))
    xp = jnp.pad(x, ((0, 0), (1, 1), (1, 1), (0, 0)))
    hidden = w1.shape[2]
    acc = jnp.zeros((N, H, W, hidden), jnp.float32)
    for tap in range(9):
        dy, dx = tap // 3, tap % 3
        patch = xp[:, dy:dy + H, dx:dx + W, :]
        acc = acc + jnp.einsum("nhwc,cf->nhwf", patch, w1[tap])
    h = jnp.maximum(acc + b1[0], 0.0)
    y = jnp.einsum("nhwf,fo->nhwo", h, w2) + b2[0]
    return jnp.transpose(y, (0, 3, 1, 2))


if __name__ == "__main__":
    key = jax.random.PRNGKey(0)
    tasks = ["semseg", "depth"]
    out_channels = {"semseg": 8, "depth": 8}

    N, C, H, W = 2, 4, 16, 16
    hidden = 32

    net = STRNetPallas(tasks, cin=C, hidden=hidden,
                       out_channels=out_channels, key=key)

    image = jax.random.normal(jax.random.fold_in(key, 1234), (N, C, H, W),
                              jnp.float32)
    batch = {"image": image}

    # STR_Net.forward is `pass`:
    assert net.forward(batch) is None

    # The mt_step hot path: out = self.model(x['image'])
    out = net.model_forward(batch["image"])
    out = jax.tree_util.tree_map(jax.block_until_ready, out)

    # Sanity-check against pure-JAX f32 reference (bf16 operands -> loosened tol).
    for task in tasks:
        p = net.params[task]
        ref = _ref_task_forward(image, p["w1"], p["b1"], p["w2"], p["b2"])
        assert out[task].shape == (N, out_channels[task], H, W)
        err = float(jnp.max(jnp.abs(out[task] - ref)))
        assert err < 5e-2, f"task {task}: max abs err {err}"

    print("KERNEL_OK")
</pallas_src>

<mosaic_0001>
module attributes {stable_mosaic.version = 11 : i64} {
  func.func @_fused_kernel(%arg0: i32, %arg1: memref<512x128xbf16, #tpu.memory_space<vmem>>, %arg2: memref<128x128xbf16, #tpu.memory_space<vmem>>, %arg3: memref<128x128xbf16, #tpu.memory_space<vmem>>, %arg4: memref<512x128xf32, #tpu.memory_space<vmem>>) attributes {dimension_semantics = [#tpu.dimension_semantics<parallel>], iteration_bounds = array<i64: 1>, scalar_prefetch = 0 : i64, scratch_operands = 0 : i64, tpu.core_type = #tpu.core_type<tc>, window_params = [{transform_indices = @transform_0, window_bounds = array<i64: 512, 128>}, {pipeline_mode = #tpu.pipeline_mode<synchronous>, transform_indices = @transform_1, window_bounds = array<i64: 128, 128>}, {pipeline_mode = #tpu.pipeline_mode<synchronous>, transform_indices = @transform_2, window_bounds = array<i64: 128, 128>}, {transform_indices = @transform_3, window_bounds = array<i64: 512, 128>}]} {
    %c0 = arith.constant 0 : index
    %c0_0 = arith.constant 0 : index
    %0 = vector.load %arg1[%c0, %c0_0] : memref<512x128xbf16, #tpu.memory_space<vmem>>, vector<512x128xbf16>
    %c0_1 = arith.constant 0 : index
    %c0_2 = arith.constant 0 : index
    %1 = vector.load %arg2[%c0_1, %c0_2] : memref<128x128xbf16, #tpu.memory_space<vmem>>, vector<128x128xbf16>
    %cst = arith.constant dense<0.000000e+00> : vector<512x128xf32>
    %2 = tpu.matmul %0, %1, %cst {dimension_numbers = #tpu.dot_dimension_numbers<[1], [0], [0], [1], [0, 0, 1, 1], [], []>} : vector<512x128xbf16>, vector<128x128xbf16>, vector<512x128xf32> -> vector<512x128xf32>
    %cst_3 = arith.constant 0.000000e+00 : f32
    %3 = vector.broadcast %cst_3 : f32 to vector<512x128xf32>
    %4 = arith.maximumf %2, %3 : vector<512x128xf32>
    %5 = arith.truncf %4 : vector<512x128xf32> to vector<512x128xbf16>
    %c0_4 = arith.constant 0 : index
    %c0_5 = arith.constant 0 : index
    %6 = vector.load %arg3[%c0_4, %c0_5] : memref<128x128xbf16, #tpu.memory_space<vmem>>, vector<128x128xbf16>
    %cst_6 = arith.constant dense<0.000000e+00> : vector<512x128xf32>
    %7 = tpu.matmul %5, %6, %cst_6 {dimension_numbers = #tpu.dot_dimension_numbers<[1], [0], [0], [1], [0, 0, 1, 1], [], []>} : vector<512x128xbf16>, vector<128x128xbf16>, vector<512x128xf32> -> vector<512x128xf32>
    %c0_7 = arith.constant 0 : index
    %c0_8 = arith.constant 0 : index
    %8 = vector.load %arg4[%c0_7, %c0_8] : memref<512x128xf32, #tpu.memory_space<vmem>>, vector<512x128xf32>
    tpu.vector_store %arg4[%c0_7, %c0_8], %7 {strides = array<i32>} : memref<512x128xf32, #tpu.memory_space<vmem>>, vector<512x128xf32>,
    return
  }
  func.func @transform_0(%arg0: i32) -> (i32, i32) {
    %c0_i32 = arith.constant 0 : i32
    %c0_i32_0 = arith.constant 0 : i32
    return %arg0, %c0_i32 : i32, i32
  }
  func.func @transform_1(%arg0: i32) -> (i32, i32) {
    %c0_i32 = arith.constant 0 : i32
    %c0_i32_0 = arith.constant 0 : i32
    %c0_i32_1 = arith.constant 0 : i32
    return %c0_i32, %c0_i32_0 : i32, i32
  }
  func.func @transform_2(%arg0: i32) -> (i32, i32) {
    %c0_i32 = arith.constant 0 : i32
    %c0_i32_0 = arith.constant 0 : i32
    %c0_i32_1 = arith.constant 0 : i32
    return %c0_i32, %c0_i32_0 : i32, i32
  }
  func.func @transform_3(%arg0: i32) -> (i32, i32) {
    %c0_i32 = arith.constant 0 : i32
    %c0_i32_0 = arith.constant 0 : i32
    return %arg0, %c0_i32 : i32, i32
  }
}

</mosaic_0001>

<bundles_post_ra>
// kernel: tpu_custom_call.1
= control target key start
LH: loop header
LB: loop body
LE: loop exit
PB: predicated region body
PF: predicated region fallthrough
CT: control target
= control target key end

     0   :  { %8 = vsyncpa [#allocation3], 0  ;;  %s1727_s0 = inlined_call_operand.hbm [shape: bf16[512,128], index: 0, kind: input, shape index: {}]   ;;  %s1728_s1 = inlined_call_operand.hbm [shape: bf16[128,128], index: 1, kind: input, shape index: {}]   ;;  %s1729_s2 = inlined_call_operand.hbm [shape: bf16[128,128], index: 2, kind: input, shape index: {}]   ;;  %s1730_s3 = inlined_call_operand.hbm [shape: f32[512,128], index: 3, kind: output, shape index: {}]  }
   0x1   :  { %9 = vsyncpa [#allocation6], 0 }
   0x2   :  { %10 = vsyncpa [#allocation4], 0  ;;  %s1635_s12 = smov [#allocation5]   ;;  %s1636_s14 = smov [#allocation2]  }
   0x3   :  { %s28_s13 = sshll.u32 %s1635_s12, 4  ;;  %s16_s15 = sshll.u32 %s1636_s14, 4  ;;  %s29_s13 = int_to_ptr.vmem [resolvable:$true] %s28_s13  ;;  %s1663_s15 = int_to_ptr.vmem [resolvable:$true] %s16_s15 }
   0x4   :  { %s1541_s18 = scalar_lea.hbm %s1728_s1, 1024 }
   0x5   :  { %p1542_p0 = scmp.ne.s32.totalorder %s1728_s1, %s1541_s18  ;;  %p1545_p1 = scmp.lt.u32.totalorder %s1541_s18, %s1728_s1 }
   0x7   :  { %p1547_p2 = pnand %p1545_p1, %p1542_p0 }
   0x9   :  { %1550 = shalt.err (!%p1547_p2)
}
   0xa   :  { %s1551_s23 = scalar_lea.vmem %s29_s13, 1024  ;;  %p1556_p4 = scmp.lt.s32.totalorder %s29_s13, %s29_s13 }
   0xb   :  { %p1552_p3 = scmp.ne.s32.totalorder %s29_s13, %s1551_s23  ;;  %p1557_p5 = scmp.lt.s32.totalorder %s1551_s23, %s1551_s23 }
   0xd   :  { %p1558_p6 = por %p1557_p5, %p1556_p4 }
   0xf   :  { %p1559_p7 = pnand %p1558_p6, %p1552_p3 }
  0x11   :  { %1562 = shalt.err (!%p1559_p7)
}
  0x12   :  { %s1637_s24 = smov 64   ;;  %s1638_s25 = smov 4  }
  0x13   :  { %34 = dma.hbm_to_vmem [thread:$0]  %s1728_s1, 1024, %s29_s13, [#allocation6], %s1637_s24, %s1637_s24, %s1638_s25  }
  0x14   :  { %s1563_s30 = scalar_lea.hbm %s1727_s0, 4096 }
  0x15   :  { %p1564_p8 = scmp.ne.s32.totalorder %s1727_s0, %s1563_s30  ;;  %p1567_p9 = scmp.lt.u32.totalorder %s1563_s30, %s1727_s0 }
  0x17   :  { %p1569_p10 = pnand %p1567_p9, %p1564_p8 }
  0x19   :  { %1572 = shalt.err (!%p1569_p10)
}
  0x1a   :  { %s1573_s8 = scalar_lea.vmem %s1663_s15, 4096  ;;  %p1578_p12 = scmp.lt.s32.totalorder %s1663_s15, %s1663_s15 }
  0x1b   :  { %p1574_p11 = scmp.ne.s32.totalorder %s1663_s15, %s1573_s8  ;;  %p1579_p13 = scmp.lt.s32.totalorder %s1573_s8, %s1573_s8 }
  0x1d   :  { %p1580_p0 = por %p1579_p13, %p1578_p12 }
  0x1f   :  { %p1581_p1 = pnand %p1580_p0, %p1574_p11 }
  0x21   :  { %1584 = shalt.err (!%p1581_p1)
}
  0x22   :  { %22 = dma.hbm_to_vmem [thread:$0]  %s1727_s0, 4096, %s1663_s15, [#allocation3], %s1637_s24, %s1637_s24, %s1638_s25  }
  0x23   :  { %s1639_s10 = smov [#allocation7]   ;;  %s1585_s14 = scalar_lea.hbm %s1729_s2, 1024 }
  0x24   :  { %s40_s11 = sshll.u32 %s1639_s10, 4  ;;  %p1586_p2 = scmp.ne.s32.totalorder %s1729_s2, %s1585_s14  ;;  %s41_s11 = int_to_ptr.vmem [resolvable:$true] %s40_s11 }
  0x25   :  { %p1589_p3 = scmp.lt.u32.totalorder %s1585_s14, %s1729_s2 }
  0x27   :  { %p1591_p4 = pnand %p1589_p3, %p1586_p2 }
  0x29   :  { %1594 = shalt.err (!%p1591_p4)
}
  0x2a   :  { %s1595_s20 = scalar_lea.vmem %s41_s11, 1024  ;;  %p1600_p6 = scmp.lt.s32.totalorder %s41_s11, %s41_s11 }
  0x2b   :  { %p1596_p5 = scmp.ne.s32.totalorder %s41_s11, %s1595_s20  ;;  %p1601_p7 = scmp.lt.s32.totalorder %s1595_s20, %s1595_s20 }
  0x2d   :  { %p1602_p8 = por %p1601_p7, %p1600_p6 }
  0x2f   :  { %p1603_p9 = pnand %p1602_p8, %p1596_p5 }
  0x31   :  { %1606 = shalt.err (!%p1603_p9)
}
  0x32   :  { %46 = dma.hbm_to_vmem [thread:$0]  %s1729_s2, 1024, %s41_s11, [#allocation6], %s1637_s24, %s1637_s24, %s1638_s25  }
  0x33   :  { %1629 = dma.done.wait [#allocation3], 4096  }
  0x34   :  { %1630 = vsyncadd [#allocation3], 4294963200 }
  0x35   :  { %1631 = dma.done.wait [#allocation6], 2048  }
  0x36   :  { %1632 = vsyncadd [#allocation6], 4294965248  ;;  %v1493_v0 = vld [vmem:[#allocation5] sm:$0xff]   ;;  %v1494_v1 = vld [vmem:[#allocation5 + $0x8] sm:$0xff]   ;;  %s1640_s2 = smov [#allocation8]  }
  0x37   :  { %1325 = vmatprep.subr.bf16.mxu0 %v1493_v0  ;;  %v1495_v2 = vld [vmem:[#allocation5 + $0x10] sm:$0xff]   ;;  %v1496_v3 = vld [vmem:[#allocation5 + $0x18] sm:$0xff]   ;;  %v1501_v4 = vld [vmem:[#allocation2] sm:$0xff]   ;;  %s1184_s21 = sshll.u32 %s1640_s2, 4  ;;  %s1185_s21 = int_to_ptr.vmem [resolvable:$true] %s1184_s21 }
  0x38   :  { %1326 = vmatpush3.bf16.msra.mxu0 %v1493_v0  ;;  %1341 = vmatprep.mubr.bf16.mxu0 %v1501_v4  ;;  %v1497_v5 = vld [vmem:[#allocation5 + $0x20] sm:$0xff]   ;;  %v1498_v6 = vld [vmem:[#allocation5 + $0x28] sm:$0xff]   ;;  %v1499_v7 = vld [vmem:[#allocation5 + $0x30] sm:$0xff]   ;;  %s1607_s22 = scalar_lea.vmem %s1185_s21, 8192  ;;  %p1612_p11 = scmp.lt.s32.totalorder %s1185_s21, %s1185_s21 }
  0x39   :  { %1327 = vmatprep.subr.bf16.mxu0 %v1494_v1  ;;  %v1500_v8 = vld [vmem:[#allocation5 + $0x38] sm:$0xff]   ;;  %v1502_v9 = vld [vmem:[#allocation2 + $0x8] sm:$0xff]   ;;  %v1503_v10 = vld [vmem:[#allocation2 + $0x10] sm:$0xff]   ;;  %p1608_p10 = scmp.ne.s32.totalorder %s1185_s21, %s1607_s22  ;;  %p1613_p12 = scmp.lt.s32.totalorder %s1607_s22, %s1607_s22 }
  0x3a   :  { %v1504_v11 = vld [vmem:[#allocation2 + $0x18] sm:$0xff]   ;;  %v1505_v12 = vld [vmem:[#allocation2 + $0x20] sm:$0xff]   ;;  %v1534_v14 = vld [vmem:[#allocation7 + $0x8] sm:$0xff]  }
  0x3b   :  { %v1533_v13 = vld [vmem:[#allocation7] sm:$0xff]   ;;  %v1535_v15 = vld [vmem:[#allocation7 + $0x10] sm:$0xff]   ;;  %v1506_v16 = vld [vmem:[#allocation2 + $0x28] sm:$0xff]   ;;  %p1614_p13 = por %p1613_p12, %p1612_p11 }
  0x3c   :  { %1328 = vmatpush3.bf16.msra.mxu0 %v1494_v1  ;;  %1405 = vmatprep.subr.bf16.mxu1 %v1533_v13  ;;  %v1507_v17 = vld [vmem:[#allocation2 + $0x30] sm:$0xff]   ;;  %v1536_v18 = vld [vmem:[#allocation7 + $0x18] sm:$0xff]   ;;  %v1537_v19 = vld [vmem:[#allocation7 + $0x20] sm:$0xff]  }
  0x3d   :  { %1329 = vmatprep.subr.bf16.mxu0 %v1495_v2  ;;  %1406 = vmatpush3.bf16.msra.mxu1 %v1533_v13  ;;  %v1508_v20 = vld [vmem:[#allocation2 + $0x38] sm:$0xff]   ;;  %v1509_v21 = vld [vmem:[#allocation2 + $0x40] sm:$0xff]   ;;  %v1538_v22 = vld [vmem:[#allocation7 + $0x28] sm:$0xff]   ;;  %p1615_p0 = pnand %p1614_p13, %p1608_p10 }
  0x3e   :  { %1407 = vmatprep.subr.bf16.mxu1 %v1534_v14  ;;  %v1510_v23 = vld [vmem:[#allocation2 + $0x48] sm:$0xff]   ;;  %v1511_v24 = vld [vmem:[#allocation2 + $0x50] sm:$0xff]   ;;  %v1512_v25 = vld [vmem:[#allocation2 + $0x58] sm:$0xff]  }
  0x3f   :  { %v1513_v26 = vld [vmem:[#allocation2 + $0x60] sm:$0xff]   ;;  %v1514_v27 = vld [vmem:[#allocation2 + $0x68] sm:$0xff]   ;;  %v1515_v28 = vld [vmem:[#allocation2 + $0x70] sm:$0xff]  }
  0x40   :  { %1330 = vmatpush3.bf16.msra.mxu0 %v1495_v2  ;;  %v1516_v29 = vld [vmem:[#allocation2 + $0x78] sm:$0xff]   ;;  %v1517_v30 = vld [vmem:[#allocation2 + $0x80] sm:$0xff]   ;;  %v1518_v31 = vld [vmem:[#allocation2 + $0x88] sm:$0xff]  }
  0x41   :  { %1331 = vmatprep.subr.bf16.mxu0 %v1496_v3  ;;  %1408 = vmatpush3.bf16.msra.mxu1 %v1534_v14  ;;  %v1519_v32 = vld [vmem:[#allocation2 + $0x90] sm:$0xff]   ;;  %v1520_v33 = vld [vmem:[#allocation2 + $0x98] sm:$0xff]   ;;  %v1521_v34 = vld [vmem:[#allocation2 + $0xa0] sm:$0xff]  }
  0x42   :  { %1409 = vmatprep.subr.bf16.mxu1 %v1535_v15  ;;  %v1522_v35 = vld [vmem:[#allocation2 + $0xa8] sm:$0xff]   ;;  %v1523_v36 = vld [vmem:[#allocation2 + $0xb0] sm:$0xff]   ;;  %v1524_v38 = vld [vmem:[#allocation2 + $0xb8] sm:$0xff]  }
  0x43   :  { %v1539_v37 = vld [vmem:[#allocation7 + $0x30] sm:$0xff]   ;;  %v1525_v39 = vld [vmem:[#allocation2 + $0xc0] sm:$0xff]   ;;  %v1540_v40 = vld [vmem:[#allocation7 + $0x38] sm:$0xff]  }
  0x44   :  { %1332 = vmatpush3.bf16.msra.mxu0 %v1496_v3  ;;  %v1526_v41 = vld [vmem:[#allocation2 + $0xc8] sm:$0xff]   ;;  %v1527_v42 = vld [vmem:[#allocation2 + $0xd0] sm:$0xff]   ;;  %v1528_v43 = vld [vmem:[#allocation2 + $0xd8] sm:$0xff]  }
  0x45   :  { %1333 = vmatprep.subr.bf16.mxu0 %v1497_v5  ;;  %1410 = vmatpush3.bf16.msra.mxu1 %v1535_v15  ;;  %v1529_v44 = vld [vmem:[#allocation2 + $0xe0] sm:$0xff]   ;;  %v1530_v45 = vld [vmem:[#allocation2 + $0xe8] sm:$0xff]   ;;  %v1531_v46 = vld [vmem:[#allocation2 + $0xf0] sm:$0xff]  }
  0x46   :  { %1411 = vmatprep.subr.bf16.mxu1 %v1536_v18  ;;  %v1532_v47 = vld [vmem:[#allocation2 + $0xf8] sm:$0xff]  }
  0x48   :  { %1334 = vmatpush3.bf16.msra.mxu0 %v1497_v5 }
  0x49   :  { %1335 = vmatprep.subr.bf16.mxu0 %v1498_v6  ;;  %1412 = vmatpush3.bf16.msra.mxu1 %v1536_v18 }
  0x4a   :  { %1413 = vmatprep.subr.bf16.mxu1 %v1537_v19 }
  0x4c   :  { %1336 = vmatpush3.bf16.msra.mxu0 %v1498_v6 }
  0x4d   :  { %1337 = vmatprep.subr.bf16.mxu0 %v1499_v7  ;;  %1414 = vmatpush3.bf16.msra.mxu1 %v1537_v19 }
  0x4e   :  { %1415 = vmatprep.subr.bf16.mxu1 %v1538_v22 }
  0x50   :  { %1338 = vmatpush3.bf16.msra.mxu0 %v1499_v7 }
  0x51   :  { %1339 = vmatprep.subr.bf16.mxu0 %v1500_v8  ;;  %1416 = vmatpush3.bf16.msra.mxu1 %v1538_v22 }
  0x52   :  { %1417 = vmatprep.subr.bf16.mxu1 %v1539_v37 }
  0x54   :  { %1340 = vmatpush3.bf16.msra.mxu0 %v1500_v8 }
  0x55   :  { %1418 = vmatpush3.bf16.msra.mxu1 %v1539_v37 }
  0x56   :  { %1419 = vmatprep.subr.bf16.mxu1 %v1540_v40 }
  0x57   :  { %1342 = vmatmul.mubr.bf16.vlgmr.msra.gmra.mrb[0].mxu0 %v1502_v9 }
  0x58   :  { %1345 = vmatprep.mubr.bf16.mxu0 %v1503_v10 }
  0x59   :  { %1420 = vmatpush3.bf16.msra.mxu1 %v1540_v40 }
  0x5f   :  { %1346 = vmatmul.mubr.bf16.gmra.mrb[4].mxu0 %v1504_v11 }
  0x60   :  { %1349 = vmatprep.mubr.bf16.mxu0 %v1505_v12 }
  0x67   :  { %1350 = vmatmul.mubr.bf16.gmra.mrb[8].mxu0 %v1506_v16 }
  0x68   :  { %1353 = vmatprep.mubr.bf16.mxu0 %v1507_v17 }
  0x6f   :  { %1354 = vmatmul.mubr.bf16.gmra.mrb[12].mxu0 %v1508_v20 }
  0x70   :  { %1357 = vmatprep.mubr.bf16.mxu0 %v1509_v21 }
  0x77   :  { %1358 = vmatmul.mubr.bf16.gmra.mrb[16].mxu0 %v1510_v23 }
  0x78   :  { %1361 = vmatprep.mubr.bf16.mxu0 %v1511_v24 }
  0x7f   :  { %1362 = vmatmul.mubr.bf16.gmra.mrb[20].mxu0 %v1512_v25 }
  0x80   :  { %1365 = vmatprep.mubr.bf16.mxu0 %v1513_v26 }
  0x87   :  { %1366 = vmatmul.mubr.bf16.gmra.mrb[24].mxu0 %v1514_v27 }
  0x88   :  { %1369 = vmatprep.mubr.bf16.mxu0 %v1515_v28 }
  0x8f   :  { %1370 = vmatmul.mubr.bf16.gmra.mrb[28].mxu0 %v1516_v29 }
  0x90   :  { %1373 = vmatprep.mubr.bf16.mxu0 %v1517_v30 }
  0x97   :  { %1374 = vmatmul.mubr.bf16.gmra.mrb[32].mxu0 %v1518_v31 }
  0x98   :  { %1377 = vmatprep.mubr.bf16.mxu0 %v1519_v32 }
  0x9f   :  { %1378 = vmatmul.mubr.bf16.gmra.mrb[36].mxu0 %v1520_v33 }
  0xa0   :  { %1381 = vmatprep.mubr.bf16.mxu0 %v1521_v34 }
  0xa7   :  { %1382 = vmatmul.mubr.bf16.gmra.mrb[40].mxu0 %v1522_v35 }
  0xa8   :  { %1385 = vmatprep.mubr.bf16.mxu0 %v1523_v36 }
  0xaf   :  { %1386 = vmatmul.mubr.bf16.gmra.mrb[44].mxu0 %v1524_v38 }
  0xb0   :  { %1389 = vmatprep.mubr.bf16.mxu0 %v1525_v39 }
  0xb7   :  { %1390 = vmatmul.mubr.bf16.gmra.mrb[48].mxu0 %v1526_v41 }
  0xb8   :  { %1393 = vmatprep.mubr.bf16.mxu0 %v1527_v42 }
  0xbf   :  { %1394 = vmatmul.mubr.bf16.gmra.mrb[52].mxu0 %v1528_v43 }
  0xc0   :  { %1397 = vmatprep.mubr.bf16.mxu0 %v1529_v44 }
  0xc7   :  { %1398 = vmatmul.mubr.bf16.gmra.mrb[56].mxu0 %v1530_v45 }
  0xc8   :  { %1401 = vmatprep.mubr.bf16.mxu0 %v1531_v46 }
  0xcf   :  { %1402 = vmatmul.mubr.bf16.gmra.mrb[60].mxu0 %v1532_v47 }
 0x12a   :  { %v1343_v48 = vpop.f32.mrb[0].mxu0 }
 0x12b   :  { %v411_v49 = vpop.f32.mrb[1].mxu0  ;;  %v668_v51 = vmax.f32 %v1343_v48, 0.0 }
 0x12c   :  { %v1344_v50 = vpop.f32.mrb[2].mxu0  ;;  %v666_v54 = vmax.f32 %v411_v49, 0.0 }
 0x12d   :  { %v669_v52 = vmax.f32 %v1344_v50, 0.0  ;;  %v414_v53 = vpop.f32.mrb[3].mxu0 }
 0x12e   :  { %v667_v55 = vmax.f32 %v414_v53, 0.0 }
 0x12f   :  { %v731_v56 = vpack.c.bf16 %v669_v52, %v668_v51 }
 0x130   :  { %v730_v57 = vpack.c.bf16 %v667_v55, %v666_v54 }
 0x132   :  { %v1347_v58 = vpop.f32.mrb[4].mxu0  ;;  %1421 = vmatprep.mubr.bf16.mxu1 %v730_v57 }
 0x133   :  { %v427_v59 = vpop.f32.mrb[5].mxu0  ;;  %1422 = vmatmul.mubr.bf16.vlgmr.msra.gmra.mrb[0].mxu1 %v731_v56  ;;  %v672_v61 = vmax.f32 %v1347_v58, 0.0 }
 0x134   :  { %v1348_v60 = vpop.f32.mrb[6].mxu0  ;;  %v670_v0 = vmax.f32 %v427_v59, 0.0 }
 0x135   :  { %v673_v62 = vmax.f32 %v1348_v60, 0.0  ;;  %v430_v63 = vpop.f32.mrb[7].mxu0 }
 0x136   :  { %v671_v1 = vmax.f32 %v430_v63, 0.0 }
 0x137   :  { %v733_v2 = vpack.c.bf16 %v673_v62, %v672_v61 }
 0x138   :  { %v732_v3 = vpack.c.bf16 %v671_v1, %v670_v0 }
 0x13a   :  { %v1351_v4 = vpop.f32.mrb[8].mxu0  ;;  %1425 = vmatprep.mubr.bf16.mxu1 %v732_v3 }
 0x13b   :  { %v443_v5 = vpop.f32.mrb[9].mxu0  ;;  %1426 = vmatmul.mubr.bf16.gmra.mrb[4].mxu1 %v733_v2  ;;  %v676_v7 = vmax.f32 %v1351_v4, 0.0 }
 0x13c   :  { %v1352_v6 = vpop.f32.mrb[10].mxu0  ;;  %v674_v10 = vmax.f32 %v443_v5, 0.0 }
 0x13d   :  { %v677_v8 = vmax.f32 %v1352_v6, 0.0  ;;  %v446_v9 = vpop.f32.mrb[11].mxu0 }
 0x13e   :  { %v675_v11 = vmax.f32 %v446_v9, 0.0 }
 0x13f   :  { %v735_v12 = vpack.c.bf16 %v677_v8, %v676_v7 }
 0x140   :  { %v734_v13 = vpack.c.bf16 %v675_v11, %v674_v10 }
 0x142   :  { %v1355_v14 = vpop.f32.mrb[12].mxu0  ;;  %1429 = vmatprep.mubr.bf16.mxu1 %v734_v13 }
 0x143   :  { %v459_v15 = vpop.f32.mrb[13].mxu0  ;;  %1430 = vmatmul.mubr.bf16.gmra.mrb[8].mxu1 %v735_v12  ;;  %v680_v17 = vmax.f32 %v1355_v14, 0.0 }
 0x144   :  { %v1356_v16 = vpop.f32.mrb[14].mxu0  ;;  %v678_v20 = vmax.f32 %v459_v15, 0.0 }
 0x145   :  { %v681_v18 = vmax.f32 %v1356_v16, 0.0  ;;  %v462_v19 = vpop.f32.mrb[15].mxu0 }
 0x146   :  { %v679_v21 = vmax.f32 %v462_v19, 0.0 }
 0x147   :  { %v737_v22 = vpack.c.bf16 %v681_v18, %v680_v17 }
 0x148   :  { %v736_v23 = vpack.c.bf16 %v679_v21, %v678_v20 }
 0x14a   :  { %v1359_v24 = vpop.f32.mrb[16].mxu0  ;;  %1433 = vmatprep.mubr.bf16.mxu1 %v736_v23 }
 0x14b   :  { %v475_v25 = vpop.f32.mrb[17].mxu0  ;;  %1434 = vmatmul.mubr.bf16.gmra.mrb[12].mxu1 %v737_v22  ;;  %v684_v27 = vmax.f32 %v1359_v24, 0.0 }
 0x14c   :  { %v1360_v26 = vpop.f32.mrb[18].mxu0  ;;  %v682_v30 = vmax.f32 %v475_v25, 0.0 }
 0x14d   :  { %v685_v28 = vmax.f32 %v1360_v26, 0.0  ;;  %v478_v29 = vpop.f32.mrb[19].mxu0 }
 0x14e   :  { %v683_v31 = vmax.f32 %v478_v29, 0.0 }
 0x14f   :  { %v739_v32 = vpack.c.bf16 %v685_v28, %v684_v27 }
 0x150   :  { %v738_v33 = vpack.c.bf16 %v683_v31, %v682_v30 }
 0x152   :  { %v1363_v34 = vpop.f32.mrb[20].mxu0  ;;  %1437 = vmatprep.mubr.bf16.mxu1 %v738_v33 }
 0x153   :  { %v491_v35 = vpop.f32.mrb[21].mxu0  ;;  %1438 = vmatmul.mubr.bf16.gmra.mrb[16].mxu1 %v739_v32  ;;  %v688_v37 = vmax.f32 %v1363_v34, 0.0 }
 0x154   :  { %v1364_v36 = vpop.f32.mrb[22].mxu0  ;;  %v686_v40 = vmax.f32 %v491_v35, 0.0 }
 0x155   :  { %v689_v38 = vmax.f32 %v1364_v36, 0.0  ;;  %v494_v39 = vpop.f32.mrb[23].mxu0 }
 0x156   :  { %v687_v41 = vmax.f32 %v494_v39, 0.0 }
 0x157   :  { %v741_v42 = vpack.c.bf16 %v689_v38, %v688_v37 }
 0x158   :  { %v740_v43 = vpack.c.bf16 %v687_v41, %v686_v40 }
 0x15a   :  { %v1367_v44 = vpop.f32.mrb[24].mxu0  ;;  %1441 = vmatprep.mubr.bf16.mxu1 %v740_v43 }
 0x15b   :  { %v507_v45 = vpop.f32.mrb[25].mxu0  ;;  %1442 = vmatmul.mubr.bf16.gmra.mrb[20].mxu1 %v741_v42  ;;  %v692_v47 = vmax.f32 %v1367_v44, 0.0 }
 0x15c   :  { %v1368_v46 = vpop.f32.mrb[26].mxu0  ;;  %v690_v50 = vmax.f32 %v507_v45, 0.0 }
 0x15d   :  { %v693_v48 = vmax.f32 %v1368_v46, 0.0  ;;  %v510_v49 = vpop.f32.mrb[27].mxu0 }
 0x15e   :  { %v691_v51 = vmax.f32 %v510_v49, 0.0 }
 0x15f   :  { %v743_v52 = vpack.c.bf16 %v693_v48, %v692_v47 }
 0x160   :  { %v742_v53 = vpack.c.bf16 %v691_v51, %v690_v50 }
 0x162   :  { %v1371_v54 = vpop.f32.mrb[28].mxu0  ;;  %1445 = vmatprep.mubr.bf16.mxu1 %v742_v53 }
 0x163   :  { %v523_v55 = vpop.f32.mrb[29].mxu0  ;;  %1446 = vmatmul.mubr.bf16.gmra.mrb[24].mxu1 %v743_v52  ;;  %v696_v57 = vmax.f32 %v1371_v54, 0.0 }
 0x164   :  { %v1372_v56 = vpop.f32.mrb[30].mxu0  ;;  %v694_v60 = vmax.f32 %v523_v55, 0.0 }
 0x165   :  { %v697_v58 = vmax.f32 %v1372_v56, 0.0  ;;  %v526_v59 = vpop.f32.mrb[31].mxu0 }
 0x166   :  { %v695_v61 = vmax.f32 %v526_v59, 0.0 }
 0x167   :  { %v745_v62 = vpack.c.bf16 %v697_v58, %v696_v57 }
 0x168   :  { %v744_v63 = vpack.c.bf16 %v695_v61, %v694_v60 }
 0x16a   :  { %v1375_v0 = vpop.f32.mrb[32].mxu0  ;;  %1449 = vmatprep.mubr.bf16.mxu1 %v744_v63 }
 0x16b   :  { %v539_v1 = vpop.f32.mrb[33].mxu0  ;;  %1450 = vmatmul.mubr.bf16.gmra.mrb[28].mxu1 %v745_v62  ;;  %v700_v3 = vmax.f32 %v1375_v0, 0.0 }
 0x16c   :  { %v1376_v2 = vpop.f32.mrb[34].mxu0  ;;  %v698_v6 = vmax.f32 %v539_v1, 0.0 }
 0x16d   :  { %v701_v4 = vmax.f32 %v1376_v2, 0.0  ;;  %v542_v5 = vpop.f32.mrb[35].mxu0 }
 0x16e   :  { %v699_v7 = vmax.f32 %v542_v5, 0.0 }
 0x16f   :  { %v747_v8 = vpack.c.bf16 %v701_v4, %v700_v3 }
 0x170   :  { %v746_v9 = vpack.c.bf16 %v699_v7, %v698_v6 }
 0x172   :  { %v1379_v10 = vpop.f32.mrb[36].mxu0  ;;  %1453 = vmatprep.mubr.bf16.mxu1 %v746_v9 }
 0x173   :  { %v555_v11 = vpop.f32.mrb[37].mxu0  ;;  %1454 = vmatmul.mubr.bf16.gmra.mrb[32].mxu1 %v747_v8  ;;  %v704_v13 = vmax.f32 %v1379_v10, 0.0 }
 0x174   :  { %v1380_v12 = vpop.f32.mrb[38].mxu0  ;;  %v702_v16 = vmax.f32 %v555_v11, 0.0 }
 0x175   :  { %v705_v14 = vmax.f32 %v1380_v12, 0.0  ;;  %v558_v15 = vpop.f32.mrb[39].mxu0 }
 0x176   :  { %v703_v17 = vmax.f32 %v558_v15, 0.0 }
 0x177   :  { %v749_v18 = vpack.c.bf16 %v705_v14, %v704_v13 }
 0x178   :  { %v748_v19 = vpack.c.bf16 %v703_v17, %v702_v16 }
 0x17a   :  { %v1383_v20 = vpop.f32.mrb[40].mxu0  ;;  %1457 = vmatprep.mubr.bf16.mxu1 %v748_v19 }
 0x17b   :  { %v571_v21 = vpop.f32.mrb[41].mxu0  ;;  %1458 = vmatmul.mubr.bf16.gmra.mrb[36].mxu1 %v749_v18  ;;  %v708_v23 = vmax.f32 %v1383_v20, 0.0 }
 0x17c   :  { %v1384_v22 = vpop.f32.mrb[42].mxu0  ;;  %v706_v26 = vmax.f32 %v571_v21, 0.0 }
 0x17d   :  { %v709_v24 = vmax.f32 %v1384_v22, 0.0  ;;  %v574_v25 = vpop.f32.mrb[43].mxu0 }
 0x17e   :  { %v707_v27 = vmax.f32 %v574_v25, 0.0 }
 0x17f   :  { %v751_v28 = vpack.c.bf16 %v709_v24, %v708_v23 }
 0x180   :  { %v750_v29 = vpack.c.bf16 %v707_v27, %v706_v26 }
 0x182   :  { %v1387_v30 = vpop.f32.mrb[44].mxu0  ;;  %1461 = vmatprep.mubr.bf16.mxu1 %v750_v29 }
 0x183   :  { %v587_v31 = vpop.f32.mrb[45].mxu0  ;;  %1462 = vmatmul.mubr.bf16.gmra.mrb[40].mxu1 %v751_v28  ;;  %v712_v33 = vmax.f32 %v1387_v30, 0.0 }
 0x184   :  { %v1388_v32 = vpop.f32.mrb[46].mxu0  ;;  %v710_v36 = vmax.f32 %v587_v31, 0.0 }
 0x185   :  { %v713_v34 = vmax.f32 %v1388_v32, 0.0  ;;  %v590_v35 = vpop.f32.mrb[47].mxu0 }
 0x186   :  { %v711_v37 = vmax.f32 %v590_v35, 0.0 }
 0x187   :  { %v753_v38 = vpack.c.bf16 %v713_v34, %v712_v33 }
 0x188   :  { %v752_v39 = vpack.c.bf16 %v711_v37, %v710_v36 }
 0x18a   :  { %v1391_v40 = vpop.f32.mrb[48].mxu0  ;;  %1465 = vmatprep.mubr.bf16.mxu1 %v752_v39 }
 0x18b   :  { %v603_v41 = vpop.f32.mrb[49].mxu0  ;;  %1466 = vmatmul.mubr.bf16.gmra.mrb[44].mxu1 %v753_v38  ;;  %v716_v43 = vmax.f32 %v1391_v40, 0.0 }
 0x18c   :  { %v1392_v42 = vpop.f32.mrb[50].mxu0  ;;  %v714_v46 = vmax.f32 %v603_v41, 0.0 }
 0x18d   :  { %v717_v44 = vmax.f32 %v1392_v42, 0.0  ;;  %v606_v45 = vpop.f32.mrb[51].mxu0 }
 0x18e   :  { %v715_v47 = vmax.f32 %v606_v45, 0.0 }
 0x18f   :  { %v755_v48 = vpack.c.bf16 %v717_v44, %v716_v43 }
 0x190   :  { %v754_v49 = vpack.c.bf16 %v715_v47, %v714_v46 }
 0x192   :  { %v1395_v50 = vpop.f32.mrb[52].mxu0  ;;  %1469 = vmatprep.mubr.bf16.mxu1 %v754_v49 }
 0x193   :  { %v619_v51 = vpop.f32.mrb[53].mxu0  ;;  %1470 = vmatmul.mubr.bf16.gmra.mrb[48].mxu1 %v755_v48  ;;  %v720_v53 = vmax.f32 %v1395_v50, 0.0 }
 0x194   :  { %v1396_v52 = vpop.f32.mrb[54].mxu0  ;;  %v718_v56 = vmax.f32 %v619_v51, 0.0 }
 0x195   :  { %v721_v54 = vmax.f32 %v1396_v52, 0.0  ;;  %v622_v55 = vpop.f32.mrb[55].mxu0 }
 0x196   :  { %v719_v57 = vmax.f32 %v622_v55, 0.0 }
 0x197   :  { %v757_v58 = vpack.c.bf16 %v721_v54, %v720_v53 }
 0x198   :  { %v756_v59 = vpack.c.bf16 %v719_v57, %v718_v56 }
 0x19a   :  { %v1399_v60 = vpop.f32.mrb[56].mxu0  ;;  %1473 = vmatprep.mubr.bf16.mxu1 %v756_v59 }
 0x19b   :  { %v635_v61 = vpop.f32.mrb[57].mxu0  ;;  %1474 = vmatmul.mubr.bf16.gmra.mrb[52].mxu1 %v757_v58  ;;  %v724_v63 = vmax.f32 %v1399_v60, 0.0 }
 0x19c   :  { %v1400_v62 = vpop.f32.mrb[58].mxu0  ;;  %v722_v2 = vmax.f32 %v635_v61, 0.0 }
 0x19d   :  { %v725_v0 = vmax.f32 %v1400_v62, 0.0  ;;  %v638_v1 = vpop.f32.mrb[59].mxu0 }
 0x19e   :  { %v723_v3 = vmax.f32 %v638_v1, 0.0 }
 0x19f   :  { %v759_v4 = vpack.c.bf16 %v725_v0, %v724_v63 }
 0x1a0   :  { %v758_v5 = vpack.c.bf16 %v723_v3, %v722_v2 }
 0x1a2   :  { %v1403_v6 = vpop.f32.mrb[60].mxu0  ;;  %1477 = vmatprep.mubr.bf16.mxu1 %v758_v5 }
 0x1a3   :  { %v651_v7 = vpop.f32.mrb[61].mxu0  ;;  %1478 = vmatmul.mubr.bf16.gmra.mrb[56].mxu1 %v759_v4  ;;  %v728_v9 = vmax.f32 %v1403_v6, 0.0 }
 0x1a4   :  { %v1404_v8 = vpop.f32.mrb[62].mxu0  ;;  %v726_v12 = vmax.f32 %v651_v7, 0.0 }
 0x1a5   :  { %v729_v10 = vmax.f32 %v1404_v8, 0.0  ;;  %v654_v11 = vpop.f32.mrb[63].mxu0 }
 0x1a6   :  { %v727_v13 = vmax.f32 %v654_v11, 0.0 }
 0x1a7   :  { %v761_v14 = vpack.c.bf16 %v729_v10, %v728_v9 }
 0x1a8   :  { %v760_v15 = vpack.c.bf16 %v727_v13, %v726_v12 }
 0x1aa   :  { %1481 = vmatprep.mubr.bf16.mxu1 %v760_v15 }
 0x1ab   :  { %1482 = vmatmul.mubr.bf16.gmra.mrb[60].mxu1 %v761_v14 }
 0x206   :  { %v1423_v16 = vpop.f32.mrb[0].mxu1 }
 0x207   :  { %1117 = vst [vmem:[#allocation8 + $0x10] sm:$0xff] %v1423_v16  ;;  %v860_v17 = vpop.f32.mrb[1].mxu1 }
 0x208   :  { %1115 = vst [vmem:[#allocation8] sm:$0xff] %v860_v17  ;;  %v1424_v18 = vpop.f32.mrb[2].mxu1 }
 0x209   :  { %1118 = vst [vmem:[#allocation8 + $0x18] sm:$0xff] %v1424_v18  ;;  %v863_v19 = vpop.f32.mrb[3].mxu1 }
 0x20a   :  { %1116 = vst [vmem:[#allocation8 + $0x8] sm:$0xff] %v863_v19 }
 0x20e   :  { %v1427_v20 = vpop.f32.mrb[4].mxu1 }
 0x20f   :  { %1121 = vst [vmem:[#allocation8 + $0x30] sm:$0xff] %v1427_v20  ;;  %v876_v21 = vpop.f32.mrb[5].mxu1 }
 0x210   :  { %1119 = vst [vmem:[#allocation8 + $0x20] sm:$0xff] %v876_v21  ;;  %v1428_v22 = vpop.f32.mrb[6].mxu1 }
 0x211   :  { %1122 = vst [vmem:[#allocation8 + $0x38] sm:$0xff] %v1428_v22  ;;  %v879_v23 = vpop.f32.mrb[7].mxu1 }
 0x212   :  { %1120 = vst [vmem:[#allocation8 + $0x28] sm:$0xff] %v879_v23 }
 0x216   :  { %v1431_v24 = vpop.f32.mrb[8].mxu1 }
 0x217   :  { %1125 = vst [vmem:[#allocation8 + $0x50] sm:$0xff] %v1431_v24  ;;  %v892_v25 = vpop.f32.mrb[9].mxu1 }
 0x218   :  { %1123 = vst [vmem:[#allocation8 + $0x40] sm:$0xff] %v892_v25  ;;  %v1432_v26 = vpop.f32.mrb[10].mxu1 }
 0x219   :  { %1126 = vst [vmem:[#allocation8 + $0x58] sm:$0xff] %v1432_v26  ;;  %v895_v27 = vpop.f32.mrb[11].mxu1 }
 0x21a   :  { %1124 = vst [vmem:[#allocation8 + $0x48] sm:$0xff] %v895_v27 }
 0x21e   :  { %v1435_v28 = vpop.f32.mrb[12].mxu1 }
 0x21f   :  { %1129 = vst [vmem:[#allocation8 + $0x70] sm:$0xff] %v1435_v28  ;;  %v908_v29 = vpop.f32.mrb[13].mxu1 }
 0x220   :  { %1127 = vst [vmem:[#allocation8 + $0x60] sm:$0xff] %v908_v29  ;;  %v1436_v30 = vpop.f32.mrb[14].mxu1 }
 0x221   :  { %1130 = vst [vmem:[#allocation8 + $0x78] sm:$0xff] %v1436_v30  ;;  %v911_v31 = vpop.f32.mrb[15].mxu1 }
 0x222   :  { %1128 = vst [vmem:[#allocation8 + $0x68] sm:$0xff] %v911_v31 }
 0x226   :  { %v1439_v32 = vpop.f32.mrb[16].mxu1 }
 0x227   :  { %1133 = vst [vmem:[#allocation8 + $0x90] sm:$0xff] %v1439_v32  ;;  %v924_v33 = vpop.f32.mrb[17].mxu1 }
 0x228   :  { %1131 = vst [vmem:[#allocation8 + $0x80] sm:$0xff] %v924_v33  ;;  %v1440_v34 = vpop.f32.mrb[18].mxu1 }
 0x229   :  { %1134 = vst [vmem:[#allocation8 + $0x98] sm:$0xff] %v1440_v34  ;;  %v927_v35 = vpop.f32.mrb[19].mxu1 }
 0x22a   :  { %1132 = vst [vmem:[#allocation8 + $0x88] sm:$0xff] %v927_v35 }
 0x22e   :  { %v1443_v36 = vpop.f32.mrb[20].mxu1 }
 0x22f   :  { %1137 = vst [vmem:[#allocation8 + $0xb0] sm:$0xff] %v1443_v36  ;;  %v940_v37 = vpop.f32.mrb[21].mxu1 }
 0x230   :  { %1135 = vst [vmem:[#allocation8 + $0xa0] sm:$0xff] %v940_v37  ;;  %v1444_v38 = vpop.f32.mrb[22].mxu1 }
 0x231   :  { %1138 = vst [vmem:[#allocation8 + $0xb8] sm:$0xff] %v1444_v38  ;;  %v943_v39 = vpop.f32.mrb[23].mxu1 }
 0x232   :  { %1136 = vst [vmem:[#allocation8 + $0xa8] sm:$0xff] %v943_v39 }
 0x236   :  { %v1447_v40 = vpop.f32.mrb[24].mxu1 }
 0x237   :  { %1141 = vst [vmem:[#allocation8 + $0xd0] sm:$0xff] %v1447_v40  ;;  %v956_v41 = vpop.f32.mrb[25].mxu1 }
 0x238   :  { %1139 = vst [vmem:[#allocation8 + $0xc0] sm:$0xff] %v956_v41  ;;  %v1448_v42 = vpop.f32.mrb[26].mxu1 }
 0x239   :  { %1142 = vst [vmem:[#allocation8 + $0xd8] sm:$0xff] %v1448_v42  ;;  %v959_v43 = vpop.f32.mrb[27].mxu1 }
 0x23a   :  { %1140 = vst [vmem:[#allocation8 + $0xc8] sm:$0xff] %v959_v43 }
 0x23e   :  { %v1451_v44 = vpop.f32.mrb[28].mxu1 }
 0x23f   :  { %1145 = vst [vmem:[#allocation8 + $0xf0] sm:$0xff] %v1451_v44  ;;  %v972_v45 = vpop.f32.mrb[29].mxu1 }
 0x240   :  { %1143 = vst [vmem:[#allocation8 + $0xe0] sm:$0xff] %v972_v45  ;;  %v1452_v46 = vpop.f32.mrb[30].mxu1 }
 0x241   :  { %1146 = vst [vmem:[#allocation8 + $0xf8] sm:$0xff] %v1452_v46  ;;  %v975_v47 = vpop.f32.mrb[31].mxu1 }
 0x242   :  { %1144 = vst [vmem:[#allocation8 + $0xe8] sm:$0xff] %v975_v47 }
 0x246   :  { %v1455_v48 = vpop.f32.mrb[32].mxu1 }
 0x247   :  { %1149 = vst [vmem:[#allocation8 + $0x110] sm:$0xff] %v1455_v48  ;;  %v988_v49 = vpop.f32.mrb[33].mxu1 }
 0x248   :  { %1147 = vst [vmem:[#allocation8 + $0x100] sm:$0xff] %v988_v49  ;;  %v1456_v50 = vpop.f32.mrb[34].mxu1 }
 0x249   :  { %1150 = vst [vmem:[#allocation8 + $0x118] sm:$0xff] %v1456_v50  ;;  %v991_v51 = vpop.f32.mrb[35].mxu1 }
 0x24a   :  { %1148 = vst [vmem:[#allocation8 + $0x108] sm:$0xff] %v991_v51 }
 0x24e   :  { %v1459_v52 = vpop.f32.mrb[36].mxu1 }
 0x24f   :  { %1153 = vst [vmem:[#allocation8 + $0x130] sm:$0xff] %v1459_v52  ;;  %v1004_v53 = vpop.f32.mrb[37].mxu1 }
 0x250   :  { %1151 = vst [vmem:[#allocation8 + $0x120] sm:$0xff] %v1004_v53  ;;  %v1460_v54 = vpop.f32.mrb[38].mxu1 }
 0x251   :  { %1154 = vst [vmem:[#allocation8 + $0x138] sm:$0xff] %v1460_v54  ;;  %v1007_v55 = vpop.f32.mrb[39].mxu1 }
 0x252   :  { %1152 = vst [vmem:[#allocation8 + $0x128] sm:$0xff] %v1007_v55 }
 0x256   :  { %v1463_v56 = vpop.f32.mrb[40].mxu1 }
 0x257   :  { %1157 = vst [vmem:[#allocation8 + $0x150] sm:$0xff] %v1463_v56  ;;  %v1020_v57 = vpop.f32.mrb[41].mxu1 }
 0x258   :  { %1155 = vst [vmem:[#allocation8 + $0x140] sm:$0xff] %v1020_v57  ;;  %v1464_v58 = vpop.f32.mrb[42].mxu1 }
 0x259   :  { %1158 = vst [vmem:[#allocation8 + $0x158] sm:$0xff] %v1464_v58  ;;  %v1023_v59 = vpop.f32.mrb[43].mxu1 }
 0x25a   :  { %1156 = vst [vmem:[#allocation8 + $0x148] sm:$0xff] %v1023_v59 }
 0x25e   :  { %v1467_v60 = vpop.f32.mrb[44].mxu1 }
 0x25f   :  { %1161 = vst [vmem:[#allocation8 + $0x170] sm:$0xff] %v1467_v60  ;;  %v1036_v61 = vpop.f32.mrb[45].mxu1 }
 0x260   :  { %1159 = vst [vmem:[#allocation8 + $0x160] sm:$0xff] %v1036_v61  ;;  %v1468_v62 = vpop.f32.mrb[46].mxu1 }
 0x261   :  { %1162 = vst [vmem:[#allocation8 + $0x178] sm:$0xff] %v1468_v62  ;;  %v1039_v63 = vpop.f32.mrb[47].mxu1 }
 0x262   :  { %1160 = vst [vmem:[#allocation8 + $0x168] sm:$0xff] %v1039_v63 }
 0x266   :  { %v1471_v0 = vpop.f32.mrb[48].mxu1 }
 0x267   :  { %1165 = vst [vmem:[#allocation8 + $0x190] sm:$0xff] %v1471_v0  ;;  %v1052_v1 = vpop.f32.mrb[49].mxu1 }
 0x268   :  { %1163 = vst [vmem:[#allocation8 + $0x180] sm:$0xff] %v1052_v1  ;;  %v1472_v2 = vpop.f32.mrb[50].mxu1 }
 0x269   :  { %1166 = vst [vmem:[#allocation8 + $0x198] sm:$0xff] %v1472_v2  ;;  %v1055_v3 = vpop.f32.mrb[51].mxu1 }
 0x26a   :  { %1164 = vst [vmem:[#allocation8 + $0x188] sm:$0xff] %v1055_v3 }
 0x26e   :  { %v1475_v4 = vpop.f32.mrb[52].mxu1 }
 0x26f   :  { %1169 = vst [vmem:[#allocation8 + $0x1b0] sm:$0xff] %v1475_v4  ;;  %v1068_v5 = vpop.f32.mrb[53].mxu1 }
 0x270   :  { %1167 = vst [vmem:[#allocation8 + $0x1a0] sm:$0xff] %v1068_v5  ;;  %v1476_v6 = vpop.f32.mrb[54].mxu1 }
 0x271   :  { %1170 = vst [vmem:[#allocation8 + $0x1b8] sm:$0xff] %v1476_v6  ;;  %v1071_v7 = vpop.f32.mrb[55].mxu1 }
 0x272   :  { %1168 = vst [vmem:[#allocation8 + $0x1a8] sm:$0xff] %v1071_v7 }
 0x276   :  { %v1479_v8 = vpop.f32.mrb[56].mxu1 }
 0x277   :  { %1173 = vst [vmem:[#allocation8 + $0x1d0] sm:$0xff] %v1479_v8  ;;  %v1084_v9 = vpop.f32.mrb[57].mxu1 }
 0x278   :  { %1171 = vst [vmem:[#allocation8 + $0x1c0] sm:$0xff] %v1084_v9  ;;  %v1480_v10 = vpop.f32.mrb[58].mxu1 }
 0x279   :  { %1174 = vst [vmem:[#allocation8 + $0x1d8] sm:$0xff] %v1480_v10  ;;  %v1087_v11 = vpop.f32.mrb[59].mxu1 }
 0x27a   :  { %1172 = vst [vmem:[#allocation8 + $0x1c8] sm:$0xff] %v1087_v11 }
 0x27e   :  { %v1483_v12 = vpop.f32.mrb[60].mxu1 }
 0x27f   :  { %1177 = vst [vmem:[#allocation8 + $0x1f0] sm:$0xff] %v1483_v12  ;;  %v1100_v13 = vpop.f32.mrb[61].mxu1 }
 0x280   :  { %1175 = vst [vmem:[#allocation8 + $0x1e0] sm:$0xff] %v1100_v13  ;;  %v1484_v14 = vpop.f32.mrb[62].mxu1 }
 0x281   :  { %1178 = vst [vmem:[#allocation8 + $0x1f8] sm:$0xff] %v1484_v14  ;;  %v1103_v15 = vpop.f32.mrb[63].mxu1 }
 0x282   :  { %1176 = vst [vmem:[#allocation8 + $0x1e8] sm:$0xff] %v1103_v15 }
 0x283   :  { %1618 = shalt.err (!%p1615_p0)
}
 0x284   :  { %s1619_s25 = scalar_lea.hbm %s1730_s3, 8192 }
 0x285   :  { %p1620_p1 = scmp.ne.s32.totalorder %s1730_s3, %s1619_s25  ;;  %p1623_p2 = scmp.lt.u32.totalorder %s1619_s25, %s1730_s3 }
 0x287   :  { %p1625_p3 = pnand %p1623_p2, %p1620_p1 }
 0x289   :  { %1628 = shalt.err (!%p1625_p3)
}
 0x28a   :  { %s1641_s30 = smov 128   ;;  %s1642_s4 = smov 8  }
 0x28b   :  { %1190 = dma.vmem_to_hbm [thread:$0]  %s1185_s21, 8192, %s1730_s3, [#allocation4], %s1641_s30, %s1641_s30, %s1642_s4  }
 0x28c   :  { %1633 = dma.done.wait [#allocation4], 8192  }
 0x28d   :  { %1634 = vsyncadd [#allocation4], 4294959104 }
 0x28e   :  { %1194 = vsyncpa [#allocation3], 1 }
 0x28f   :  { %1195 = vsyncpa [#allocation6], 1 }
 0x290   :  { %1196 = vsyncpa [#allocation4], 1 }

</bundles_post_ra>
